<compile_context>
chip_gen: v7x
topology: tpu7x:2x2x1
jax: 0.10.0
libtpu: 0.0.40
codegen_flags: <defaults>
</compile_context>

<pallas_src>
import numpy as np
import jax
import jax.numpy as jnp
from jax import lax
from jax.experimental import pallas as pl
from jax.experimental.pallas import tpu as pltpu


def _round_up(x, m):
    return ((x + m - 1) // m) * m


# ----------------------------- fused Pallas kernel ---------------------------

def _fused_td_kernel(emb_ref, embp_ref, wiT_ref, bi_ref, w2_ref, b2_ref,
                     g1_ref, g2_ref, brow_ref, o_ref):
    # 1) per-table projections (Bilinear weight already folded into W2/b2):
    #    e1 = f_i(embedding)                (N, n_h)
    #    e2 = f_i(embedding_) @ Wk.T        (N, n_h)
    e1 = jnp.dot(emb_ref[...], wiT_ref[...],
                 preferred_element_type=jnp.float32) + bi_ref[...]
    e2 = jnp.dot(embp_ref[...], w2_ref[...],
                 preferred_element_type=jnp.float32) + b2_ref[...]

    # 2) gathers as one-hot / segment-mean matmuls on VMEM-resident tables:
    #    x1[m] = f_i(embedding)[sample_m]                       (Mp, n_h)
    #    v [m] = (segment-mean of f_i(embedding_)) @ Wk.T       (Mp, n_h)
    x1 = jnp.dot(g1_ref[...], e1, preferred_element_type=jnp.float32)
    v = jnp.dot(g2_ref[...], e2, preferred_element_type=jnp.float32)

    # 3) logit[m] = sum_h x1[m,h] * v[m,h]  (+ fused bias row), emitted as a
    #    lane-dense (1, Mp) row via an MXU reduction -> unmasked full-lane store.
    prod = x1 * v
    ones_row = jnp.ones((1, prod.shape[1]), jnp.float32)
    logits = lax.dot_general(ones_row, prod, (((1,), (1,)), ((), ())),
                             preferred_element_type=jnp.float32)   # (1, Mp)
    o_ref[...] = logits + brow_ref[...]


def _full_spec(shape):
    return pl.BlockSpec(shape, lambda i: tuple(0 for _ in shape))


def _fused_pallas_call(emb, embp, wiT, bi, w2, b2, g1, g2, brow):
    Mp = g1.shape[0]
    args = (emb, embp, wiT, bi, w2, b2, g1, g2, brow)
    return pl.pallas_call(
        _fused_td_kernel,
        out_shape=jax.ShapeDtypeStruct((1, Mp), jnp.float32),
        grid=(1,),
        in_specs=[_full_spec(a.shape) for a in args],
        out_specs=_full_spec((1, Mp)),
        compiler_params=pltpu.CompilerParams(
            dimension_semantics=("arbitrary",)),
    )(*args)


# ----------------------------- one-time param prep ---------------------------

def prepare_params(params):
    """Pre-transpose weights and fold the Bilinear weight into the
    embedding_-side projection. Done ONCE, outside the hot path."""
    n_h = params["f_i_w"].shape[0]
    wiT = jnp.asarray(params["f_i_w"], jnp.float32).T          # (n_h, n_h)
    bi = jnp.asarray(params["f_i_b"], jnp.float32)[None, :]    # (1, n_h)
    wk = jnp.asarray(params["f_k_w"], jnp.float32)[0]          # (n_h, n_h)
    w2 = wiT @ wk.T                                            # (n_h, n_h)
    b2 = bi @ wk.T                                             # (1, n_h)
    bk = float(np.asarray(params["f_k_b"]).reshape(-1)[0])
    return {"wiT": wiT, "bi": bi, "w2": w2, "b2": b2, "bk": bk, "n_h": n_h}


# ----------------------------- one-time sample prep --------------------------

def prepare_samples(grid_sizes, pos_samples, neg_samples, num_nodes, bk,
                    pos_bias=None, neg_bias=None):
    """Build the one-hot gather / segment-mean matrices and the fused
    lane-dense bias row ONCE per sample set (not per forward call)."""
    grid_sizes = np.asarray(grid_sizes, np.int64)
    pos_idx = np.asarray(pos_samples, np.int64)
    neg_idx = np.asarray(neg_samples, np.int64)
    G = grid_sizes.shape[0]
    P, Q = pos_idx.shape[0], neg_idx.shape[0]
    M = P + Q
    r = Q // P                              # assumes Q % P == 0 (as reference)
    Mp = _round_up(M, 128)                  # lane-dense logits slab
    N = int(num_nodes)

    seg_ids_pos = np.repeat(np.arange(G), grid_sizes)            # (P,)
    seg_ids_neg = np.repeat(np.arange(G), grid_sizes * r)        # (Q,)

    # segment-mean matrix over embedding_ node rows (1/count folded in)
    seg_mean = np.zeros((G, N), np.float32)
    np.add.at(seg_mean, (seg_ids_pos, pos_idx),
              1.0 / grid_sizes[seg_ids_pos].astype(np.float32))

    # x1 gather over embedding node rows: [pos_samples; neg_samples]
    g1 = np.zeros((Mp, N), np.float32)
    g1[np.arange(P), pos_idx] = 1.0
    g1[P + np.arange(Q), neg_idx] = 1.0

    # per-sample grid embedding = (sample->segment onehot) @ seg_mean
    seg_sel = np.zeros((Mp, G), np.float32)
    seg_sel[np.arange(P), seg_ids_pos] = 1.0
    seg_sel[P + np.arange(Q), seg_ids_neg] = 1.0
    g2 = seg_sel @ seg_mean                                      # (Mp, N)

    # fused bias row: bk (+ optional pos/neg biases), zeros past M
    brow_np = np.zeros((1, Mp), np.float32)
    brow_np[0, :M] = bk
    brow = jnp.asarray(brow_np)
    if pos_bias is not None:
        brow = brow.at[0, :P].add(jnp.asarray(pos_bias, jnp.float32))
    if neg_bias is not None:
        brow = brow.at[0, P:M].add(jnp.asarray(neg_bias, jnp.float32))

    return {"g1": jnp.asarray(g1), "g2": jnp.asarray(g2), "brow": brow,
            "P": P, "Q": Q, "M": M, "Mp": Mp}


# ----------------------------- forward (hot path) -----------------------------

def time_discriminator_forward(prepped, samples, embedding, embedding_):
    out_row = _fused_pallas_call(
        jnp.asarray(embedding, jnp.float32),
        jnp.asarray(embedding_, jnp.float32),
        prepped["wiT"], prepped["bi"], prepped["w2"], prepped["b2"],
        samples["g1"], samples["g2"], samples["brow"])            # (1, Mp)
    return out_row[0, :samples["M"]]


# ----------------------------- pure-JAX reference ----------------------------

def reference_forward(params, embedding, embedding_, grid_sizes,
                      pos_samples, neg_samples):
    w_i, b_i = params["f_i_w"], params["f_i_b"]
    w_k, b_k = params["f_k_w"], params["f_k_b"]
    grid_sizes = np.asarray(grid_sizes, np.int64)
    G = grid_sizes.shape[0]
    r = neg_samples.shape[0] // pos_samples.shape[0]

    emb_ = embedding_ @ w_i.T + b_i
    emb = embedding @ w_i.T + b_i
    pos_embed_ = emb_[pos_samples]
    pos_embed = emb[pos_samples]
    neg_embed = emb[neg_samples]

    seg_ids_pos = np.repeat(np.arange(G), grid_sizes)
    seg_ids_neg = np.repeat(np.arange(G), grid_sizes * r)
    seg_sum = jax.ops.segment_sum(pos_embed_, jnp.asarray(seg_ids_pos),
                                  num_segments=G)
    grid_embed = seg_sum / jnp.asarray(grid_sizes, jnp.float32)[:, None]

    pos_grid = grid_embed[jnp.asarray(seg_ids_pos)]
    neg_grid = grid_embed[jnp.asarray(seg_ids_neg)]

    pos_logits = jnp.einsum("ni,ij,nj->n", pos_embed, w_k[0], pos_grid) + b_k[0]
    neg_logits = jnp.einsum("ni,ij,nj->n", neg_embed, w_k[0], neg_grid) + b_k[0]
    return jnp.concatenate([pos_logits, neg_logits])


# ----------------------------- main -------------------------------------------

if __name__ == "__main__":
    n_h = 32          # hidden size
    N = 16            # number of nodes
    grid_sizes = [3, 2, 3]          # sums to P = 8
    P = int(sum(grid_sizes))
    r = 2
    Q = P * r

    key = jax.random.PRNGKey(0)
    k1, k2, k3, k4, k5, k6 = jax.random.split(key, 6)

    bound = 1.0 / np.sqrt(n_h)
    params = {
        "f_i_w": jax.random.uniform(k1, (n_h, n_h), jnp.float32, -bound, bound),
        "f_i_b": jax.random.uniform(k2, (n_h,), jnp.float32, -bound, bound),
        # xavier_uniform for Bilinear weight (1, n_h, n_h), bias = 0
        "f_k_w": jax.random.uniform(
            k3, (1, n_h, n_h), jnp.float32,
            -np.sqrt(6.0 / (2 * n_h)), np.sqrt(6.0 / (2 * n_h))),
        "f_k_b": jnp.zeros((1,), jnp.float32),
    }

    embedding = jax.random.normal(k4, (N, n_h), jnp.float32)
    embedding_ = jax.random.normal(k5, (N, n_h), jnp.float32)
    pos_samples = jax.random.randint(k6, (P,), 0, N)
    neg_samples = jax.random.randint(jax.random.fold_in(key, 7), (Q,), 0, N)

    prepped = prepare_params(params)           # one-time weight fold / transpose
    samples = prepare_samples(grid_sizes, pos_samples, neg_samples, N,
                              prepped["bk"])   # one-time gather matrices + bias row

    logits = time_discriminator_forward(prepped, samples, embedding, embedding_)
    logits = jax.block_until_ready(logits)

    ref = reference_forward(params, embedding, embedding_, grid_sizes,
                            pos_samples, neg_samples)
    ref = jax.block_until_ready(ref)

    assert logits.shape == (P + Q,), logits.shape
    np.testing.assert_allclose(np.asarray(logits), np.asarray(ref),
                               rtol=1e-4, atol=1e-4)
    print("KERNEL_OK")
</pallas_src>

<mosaic_0001>
module attributes {stable_mosaic.version = 11 : i64} {
  func.func @_fused_td_kernel(%arg0: i32, %arg1: memref<16x32xf32, #tpu.memory_space<vmem>>, %arg2: memref<16x32xf32, #tpu.memory_space<vmem>>, %arg3: memref<32x32xf32, #tpu.memory_space<vmem>>, %arg4: memref<1x32xf32, #tpu.memory_space<vmem>>, %arg5: memref<32x32xf32, #tpu.memory_space<vmem>>, %arg6: memref<1x32xf32, #tpu.memory_space<vmem>>, %arg7: memref<128x16xf32, #tpu.memory_space<vmem>>, %arg8: memref<128x16xf32, #tpu.memory_space<vmem>>, %arg9: memref<1x128xf32, #tpu.memory_space<vmem>>, %arg10: memref<1x128xf32, #tpu.memory_space<vmem>>) attributes {dimension_semantics = [#tpu.dimension_semantics<arbitrary>], iteration_bounds = array<i64: 1>, scalar_prefetch = 0 : i64, scratch_operands = 0 : i64, tpu.core_type = #tpu.core_type<tc>, window_params = [{pipeline_mode = #tpu.pipeline_mode<synchronous>, transform_indices = @transform_0, window_bounds = array<i64: 16, 32>}, {pipeline_mode = #tpu.pipeline_mode<synchronous>, transform_indices = @transform_1, window_bounds = array<i64: 16, 32>}, {pipeline_mode = #tpu.pipeline_mode<synchronous>, transform_indices = @transform_2, window_bounds = array<i64: 32, 32>}, {pipeline_mode = #tpu.pipeline_mode<synchronous>, transform_indices = @transform_3, window_bounds = array<i64: 1, 32>}, {pipeline_mode = #tpu.pipeline_mode<synchronous>, transform_indices = @transform_4, window_bounds = array<i64: 32, 32>}, {pipeline_mode = #tpu.pipeline_mode<synchronous>, transform_indices = @transform_5, window_bounds = array<i64: 1, 32>}, {pipeline_mode = #tpu.pipeline_mode<synchronous>, transform_indices = @transform_6, window_bounds = array<i64: 128, 16>}, {pipeline_mode = #tpu.pipeline_mode<synchronous>, transform_indices = @transform_7, window_bounds = array<i64: 128, 16>}, {pipeline_mode = #tpu.pipeline_mode<synchronous>, transform_indices = @transform_8, window_bounds = array<i64: 1, 128>}, {pipeline_mode = #tpu.pipeline_mode<synchronous>, transform_indices = @transform_9, window_bounds = array<i64: 1, 128>}]} {
    %c0 = arith.constant 0 : index
    %c0_0 = arith.constant 0 : index
    %0 = vector.load %arg1[%c0, %c0_0] : memref<16x32xf32, #tpu.memory_space<vmem>>, vector<16x32xf32>
    %c0_1 = arith.constant 0 : index
    %c0_2 = arith.constant 0 : index
    %1 = vector.load %arg3[%c0_1, %c0_2] : memref<32x32xf32, #tpu.memory_space<vmem>>, vector<32x32xf32>
    %cst = arith.constant dense<0.000000e+00> : vector<16x32xf32>
    %2 = tpu.matmul %0, %1, %cst {dimension_numbers = #tpu.dot_dimension_numbers<[1], [0], [0], [1], [0, 0, 1, 1], [], []>} : vector<16x32xf32>, vector<32x32xf32>, vector<16x32xf32> -> vector<16x32xf32>
    %c0_3 = arith.constant 0 : index
    %c0_4 = arith.constant 0 : index
    %3 = vector.load %arg4[%c0_3, %c0_4] : memref<1x32xf32, #tpu.memory_space<vmem>>, vector<1x32xf32>
    %4 = vector.broadcast %3 : vector<1x32xf32> to vector<16x32xf32>
    %5 = arith.addf %2, %4 : vector<16x32xf32>
    %c0_5 = arith.constant 0 : index
    %c0_6 = arith.constant 0 : index
    %6 = vector.load %arg2[%c0_5, %c0_6] : memref<16x32xf32, #tpu.memory_space<vmem>>, vector<16x32xf32>
    %c0_7 = arith.constant 0 : index
    %c0_8 = arith.constant 0 : index
    %7 = vector.load %arg5[%c0_7, %c0_8] : memref<32x32xf32, #tpu.memory_space<vmem>>, vector<32x32xf32>
    %cst_9 = arith.constant dense<0.000000e+00> : vector<16x32xf32>
    %8 = tpu.matmul %6, %7, %cst_9 {dimension_numbers = #tpu.dot_dimension_numbers<[1], [0], [0], [1], [0, 0, 1, 1], [], []>} : vector<16x32xf32>, vector<32x32xf32>, vector<16x32xf32> -> vector<16x32xf32>
    %c0_10 = arith.constant 0 : index
    %c0_11 = arith.constant 0 : index
    %9 = vector.load %arg6[%c0_10, %c0_11] : memref<1x32xf32, #tpu.memory_space<vmem>>, vector<1x32xf32>
    %10 = vector.broadcast %9 : vector<1x32xf32> to vector<16x32xf32>
    %11 = arith.addf %8, %10 : vector<16x32xf32>
    %c0_12 = arith.constant 0 : index
    %c0_13 = arith.constant 0 : index
    %12 = vector.load %arg7[%c0_12, %c0_13] : memref<128x16xf32, #tpu.memory_space<vmem>>, vector<128x16xf32>
    %cst_14 = arith.constant dense<0.000000e+00> : vector<128x32xf32>
    %13 = tpu.matmul %12, %5, %cst_14 {dimension_numbers = #tpu.dot_dimension_numbers<[1], [0], [0], [1], [0, 0, 1, 1], [], []>} : vector<128x16xf32>, vector<16x32xf32>, vector<128x32xf32> -> vector<128x32xf32>
    %c0_15 = arith.constant 0 : index
    %c0_16 = arith.constant 0 : index
    %14 = vector.load %arg8[%c0_15, %c0_16] : memref<128x16xf32, #tpu.memory_space<vmem>>, vector<128x16xf32>
    %cst_17 = arith.constant dense<0.000000e+00> : vector<128x32xf32>
    %15 = tpu.matmul %14, %11, %cst_17 {dimension_numbers = #tpu.dot_dimension_numbers<[1], [0], [0], [1], [0, 0, 1, 1], [], []>} : vector<128x16xf32>, vector<16x32xf32>, vector<128x32xf32> -> vector<128x32xf32>
    %16 = arith.mulf %13, %15 : vector<128x32xf32>
    %cst_18 = arith.constant 1.000000e+00 : f32
    %17 = vector.broadcast %cst_18 : f32 to vector<1x32xf32>
    %cst_19 = arith.constant dense<0.000000e+00> : vector<1x128xf32>
    %18 = tpu.matmul %17, %16, %cst_19 {dimension_numbers = #tpu.dot_dimension_numbers<[1], [1], [0], [0], [0, 0, 1, 0], [], []>} : vector<1x32xf32>, vector<128x32xf32>, vector<1x128xf32> -> vector<1x128xf32>
    %c0_20 = arith.constant 0 : index
    %c0_21 = arith.constant 0 : index
    %19 = vector.load %arg9[%c0_20, %c0_21] : memref<1x128xf32, #tpu.memory_space<vmem>>, vector<1x128xf32>
    %20 = arith.addf %18, %19 : vector<1x128xf32>
    %c0_22 = arith.constant 0 : index
    %c0_23 = arith.constant 0 : index
    %21 = vector.load %arg10[%c0_22, %c0_23] : memref<1x128xf32, #tpu.memory_space<vmem>>, vector<1x128xf32>
    tpu.vector_store %arg10[%c0_22, %c0_23], %20 {strides = array<i32>} : memref<1x128xf32, #tpu.memory_space<vmem>>, vector<1x128xf32>,
    return
  }
  func.func @transform_0(%arg0: i32) -> (i32, i32) {
    %c0_i32 = arith.constant 0 : i32
    %c0_i32_0 = arith.constant 0 : i32
    %c0_i32_1 = arith.constant 0 : i32
    return %c0_i32, %c0_i32_0 : i32, i32
  }
  func.func @transform_1(%arg0: i32) -> (i32, i32) {
    %c0_i32 = arith.constant 0 : i32
    %c0_i32_0 = arith.constant 0 : i32
    %c0_i32_1 = arith.constant 0 : i32
    return %c0_i32, %c0_i32_0 : i32, i32
  }
  func.func @transform_2(%arg0: i32) -> (i32, i32) {
    %c0_i32 = arith.constant 0 : i32
    %c0_i32_0 = arith.constant 0 : i32
    %c0_i32_1 = arith.constant 0 : i32
    return %c0_i32, %c0_i32_0 : i32, i32
  }
  func.func @transform_3(%arg0: i32) -> (i32, i32) {
    %c0_i32 = arith.constant 0 : i32
    %c0_i32_0 = arith.constant 0 : i32
    %c0_i32_1 = arith.constant 0 : i32
    return %c0_i32, %c0_i32_0 : i32, i32
  }
  func.func @transform_4(%arg0: i32) -> (i32, i32) {
    %c0_i32 = arith.constant 0 : i32
    %c0_i32_0 = arith.constant 0 : i32
    %c0_i32_1 = arith.constant 0 : i32
    return %c0_i32, %c0_i32_0 : i32, i32
  }
  func.func @transform_5(%arg0: i32) -> (i32, i32) {
    %c0_i32 = arith.constant 0 : i32
    %c0_i32_0 = arith.constant 0 : i32
    %c0_i32_1 = arith.constant 0 : i32
    return %c0_i32, %c0_i32_0 : i32, i32
  }
  func.func @transform_6(%arg0: i32) -> (i32, i32) {
    %c0_i32 = arith.constant 0 : i32
    %c0_i32_0 = arith.constant 0 : i32
    %c0_i32_1 = arith.constant 0 : i32
    return %c0_i32, %c0_i32_0 : i32, i32
  }
  func.func @transform_7(%arg0: i32) -> (i32, i32) {
    %c0_i32 = arith.constant 0 : i32
    %c0_i32_0 = arith.constant 0 : i32
    %c0_i32_1 = arith.constant 0 : i32
    return %c0_i32, %c0_i32_0 : i32, i32
  }
  func.func @transform_8(%arg0: i32) -> (i32, i32) {
    %c0_i32 = arith.constant 0 : i32
    %c0_i32_0 = arith.constant 0 : i32
    %c0_i32_1 = arith.constant 0 : i32
    return %c0_i32, %c0_i32_0 : i32, i32
  }
  func.func @transform_9(%arg0: i32) -> (i32, i32) {
    %c0_i32 = arith.constant 0 : i32
    %c0_i32_0 = arith.constant 0 : i32
    %c0_i32_1 = arith.constant 0 : i32
    return %c0_i32, %c0_i32_0 : i32, i32
  }
}

</mosaic_0001>

<bundles_post_ra>
// kernel: tpu_custom_call.1
= control target key start
LH: loop header
LB: loop body
LE: loop exit
PB: predicated region body
PF: predicated region fallthrough
CT: control target
= control target key end

     0   :  { %vm46_vm0 = vcmask 261120   ;;  %s1387_s0 = inlined_call_operand.vmem [shape: f32[16,32], index: 0, kind: input, shape index: {}]   ;;  %s1388_s1 = inlined_call_operand.vmem [shape: f32[16,32], index: 1, kind: input, shape index: {}]   ;;  %s1389_s2 = inlined_call_operand.vmem [shape: f32[32,32], index: 2, kind: input, shape index: {}]   ;;  %s1390_s3 = inlined_call_operand.vmem [shape: f32[1,32], index: 3, kind: input, shape index: {}]   ;;  %s1391_s4 = inlined_call_operand.vmem [shape: f32[32,32], index: 4, kind: input, shape index: {}]   ;;  %s1392_s5 = inlined_call_operand.vmem [shape: f32[1,32], index: 5, kind: input, shape index: {}]   ;;  %s1393_s6 = inlined_call_operand.vmem [shape: f32[128,16], index: 6, kind: input, shape index: {}]   ;;  %s1394_s7 = inlined_call_operand.vmem [shape: f32[128,16], index: 7, kind: input, shape index: {}]   ;;  %s1395_s8 = inlined_call_operand.vmem [shape: f32[1,128], index: 8, kind: input, shape index: {}]   ;;  %s1396_s9 = inlined_call_operand.hbm [shape: f32[1,128], index: 9, kind: output, shape index: {}]  }
   0x1   :  { %v35_v0 = vld [vmem:[%s1389_s2] sm:$0xff]  ;;  %v36_v1 = vld [vmem:[%s1389_s2 + $0x8] sm:$0xff]  ;;  %v37_v2 = vld [vmem:[%s1389_s2 + $0x10] sm:$0xff] }
   0x2   :  { %v1027_v3 = vpack.c.bf16 %v36_v1, %v35_v0  ;;  %v38_v4 = vld [vmem:[%s1389_s2 + $0x18] sm:$0xff]  ;;  %v33_v5 = vld [vmem:[%s1387_s0] sm:$0xff]  ;;  %v131_v8 = vld [vmem:[%s1391_s4 + $0x8] sm:$0xff] }
   0x3   :  { %v1031_v6 = vpack.c.bf16 %v38_v4, %v37_v2  ;;  %922 = vmatprep.mubr.msk.f32.mxu1 %vm46_vm0, %v33_v5  ;;  %v130_v7 = vld [vmem:[%s1391_s4] sm:$0xff] }
   0x4   :  { %1028 = vmatprep.subr.bf16.mxu1 %v1027_v3 }
   0x5   :  { %1030 = vmatpush3.bf16.msra.mxu1 %v1027_v3 }
   0x6   :  { %14 = vsyncpa [#allocation3], 0  ;;  %1032 = vmatprep.subr.bf16.mxu1 %v1031_v6  ;;  %v1035_v9 = vpack.c.bf16 %v131_v8, %v130_v7  ;;  %v132_v10 = vld [vmem:[%s1391_s4 + $0x10] sm:$0xff]  ;;  %v133_v11 = vld [vmem:[%s1391_s4 + $0x18] sm:$0xff]  ;;  %vm238_vm1 = vcmask 130048   ;;  %v1112_v60 = vmov 0.0|0.0  }
   0x7   :  { %v34_v12 = vld [vmem:[%s1387_s0 + $0x8] sm:$0xff]  ;;  %v1039_v13 = vpack.c.bf16 %v133_v11, %v132_v10  ;;  %v128_v14 = vld [vmem:[%s1388_s1] sm:$0xff]  ;;  %v224_v27 = vld [vmem:[%s1393_s6 + $0x10] sm:$0xff]  ;;  %vm1113_vm2 = vmmov 0   ;;  %v1114_v61 = vmov 0.0  }
   0x8   :  { %v129_v15 = vld [vmem:[%s1388_s1 + $0x8] sm:$0xff]  ;;  %v222_v16 = vld [vmem:[%s1393_s6] sm:$0xff]  ;;  %v225_v31 = vld [vmem:[%s1393_s6 + $0x18] sm:$0xff] }
   0x9   :  { %1034 = vmatpush3.bf16.msra.mxu1 %v1031_v6  ;;  %v432_v17 = vld [vmem:[%s1394_s7] sm:$0xff]  ;;  %940 = vmatprep.mubr.msk.f32.mxu0 %vm238_vm1, %v222_v16  ;;  %v223_v25 = vld [vmem:[%s1393_s6 + $0x8] sm:$0xff]  ;;  %v434_v36 = vld [vmem:[%s1394_s7 + $0x10] sm:$0xff] }
   0xa   :  { %1036 = vmatprep.subr.bf16.mxu1 %v1035_v9  ;;  %v794_v18 = vld [vmem:[%s1390_s3] ss:$0 sm:$0xff]  ;;  %v433_v34 = vld [vmem:[%s1394_s7 + $0x8] sm:$0xff]  ;;  %v228_v37 = vld [vmem:[%s1393_s6 + $0x30] sm:$0xff] }
   0xb   :  { %v797_v24 = vld [vmem:[%s1392_s5] ss:$0 sm:$0xff]  ;;  %v227_v35 = vld [vmem:[%s1393_s6 + $0x28] sm:$0xff]  ;;  %v435_v38 = vld [vmem:[%s1394_s7 + $0x18] sm:$0xff]  ;;  %s1116_s5 = smov [#allocation2]  }
   0xc   :  { %923 = vmatmul.mubr.msk.f32.vlgmr.msra.gmra.mrb[0].mxu1 %vm46_vm0, %v34_v12  ;;  %v226_v33 = vld [vmem:[%s1393_s6 + $0x20] sm:$0xff]  ;;  %v229_v39 = vld [vmem:[%s1393_s6 + $0x38] sm:$0xff]  ;;  %v437_v42 = vld [vmem:[%s1394_s7 + $0x28] sm:$0xff]  ;;  %s786_s21 = sshll.u32 %s1116_s5, 4  ;;  %s787_s21 = int_to_ptr.vmem [resolvable:$true] %s786_s21 }
   0xd   :  { %1038 = vmatpush3.bf16.msra.mxu1 %v1035_v9  ;;  %933 = vmatprep.mubr.msk.f32.mxu1 %vm46_vm0, %v128_v14  ;;  %v436_v40 = vld [vmem:[%s1394_s7 + $0x20] sm:$0xff]  ;;  %v231_v43 = vld [vmem:[%s1393_s6 + $0x48] sm:$0xff]  ;;  %v438_v44 = vld [vmem:[%s1394_s7 + $0x30] sm:$0xff]  ;;  %s1088_s22 = scalar_lea.vmem %s787_s21, 16  ;;  %s1092_s2 = scalar_lea.vmem %s787_s21, 32 }
   0xe   :  { %1040 = vmatprep.subr.bf16.mxu1 %v1039_v13  ;;  %v230_v41 = vld [vmem:[%s1393_s6 + $0x40] sm:$0xff]  ;;  %v232_v45 = vld [vmem:[%s1393_s6 + $0x50] sm:$0xff]  ;;  %v439_v46 = vld [vmem:[%s1394_s7 + $0x38] sm:$0xff]  ;;  %p1089_p0 = scmp.ne.s32.totalorder %s787_s21, %s1088_s22  ;;  %p1093_p1 = scmp.lt.s32.totalorder %s787_s21, %s787_s21 }
   0xf   :  { %v233_v47 = vld [vmem:[%s1393_s6 + $0x58] sm:$0xff]  ;;  %v440_v48 = vld [vmem:[%s1394_s7 + $0x40] sm:$0xff]  ;;  %v441_v50 = vld [vmem:[%s1394_s7 + $0x48] sm:$0xff]  ;;  %p1094_p2 = scmp.lt.s32.totalorder %s1092_s2, %s1088_s22 }
  0x10   :  { %v234_v49 = vld [vmem:[%s1393_s6 + $0x60] sm:$0xff]  ;;  %v235_v51 = vld [vmem:[%s1393_s6 + $0x68] sm:$0xff]  ;;  %v442_v52 = vld [vmem:[%s1394_s7 + $0x50] sm:$0xff] }
  0x11   :  { %1042 = vmatpush3.bf16.msra.mxu1 %v1039_v13  ;;  %v236_v53 = vld [vmem:[%s1393_s6 + $0x70] sm:$0xff]  ;;  %v443_v54 = vld [vmem:[%s1394_s7 + $0x58] sm:$0xff]  ;;  %v444_v56 = vld [vmem:[%s1394_s7 + $0x60] sm:$0xff]  ;;  %p1095_p3 = por %p1094_p2, %p1093_p1 }
  0x12   :  { %v237_v55 = vld [vmem:[%s1393_s6 + $0x78] sm:$0xff]  ;;  %v445_v57 = vld [vmem:[%s1394_s7 + $0x68] sm:$0xff]  ;;  %v446_v58 = vld [vmem:[%s1394_s7 + $0x70] sm:$0xff] }
  0x13   :  { %v447_v59 = vld [vmem:[%s1394_s7 + $0x78] sm:$0xff]  ;;  %vm1344_vm3 = vmpackc.low %vm46_vm0, %vm46_vm0  ;;  %p1096_p4 = pnand %p1095_p3, %p1089_p0 }
  0x14   :  { %934 = vmatmul.mubr.msk.f32.vlgmr.msra.gmra.mrb[2].mxu1 %vm46_vm0, %v129_v15 }
  0x15   :  { %968 = vmatprep.mubr.msk.f32.mxu1 %vm238_vm1, %v432_v17 }
  0xdf   :  { %v924_v19 = vpop.f32.mrb[0].mxu1 }
  0xe0   :  { %v125_v20 = vadd.f32 %v924_v19, %v794_v18  ;;  %v119_v21 = vpop.f32.mrb[1].mxu1 }
  0xe1   :  { %v120_v22 = vadd.f32 %v794_v18, %v119_v21 }
  0xe3   :  { %v1043_v23 = vpack.c.bf16 %v125_v20, %v120_v22 }
  0xe5   :  { %1044 = vmatprep.subr.bf16.mxu0 %v1043_v23 }
  0xe6   :  { %1046 = vmatpush3.bf16.msra.mxu0 %v1043_v23 }
  0xe7   :  { %v935_v26 = vpop.f32.mrb[2].mxu1  ;;  %1051 = vmatprep.subr.bf16.mxu0 %v1112_v60 }
  0xe8   :  { %v219_v28 = vadd.f32 %v935_v26, %v797_v24  ;;  %v213_v29 = vpop.f32.mrb[3].mxu1 }
  0xe9   :  { %v214_v30 = vadd.f32 %v797_v24, %v213_v29  ;;  %941 = vmatmul.mubr.msk.f32.vlgmr.msra.gmra.mrb[0].mxu0 %vm238_vm1, %v223_v25 }
  0xea   :  { %943 = vmatprep.mubr.msk.f32.mxu0 %vm238_vm1, %v224_v27 }
  0xeb   :  { %v1047_v32 = vpack.c.bf16 %v219_v28, %v214_v30 }
  0xed   :  { %1048 = vmatprep.subr.bf16.mxu1 %v1047_v32  ;;  %944 = vmatmul.mubr.msk.f32.gmra.mrb[2].mxu0 %vm238_vm1, %v225_v31 }
  0xee   :  { %1050 = vmatpush3.bf16.msra.mxu1 %v1047_v32  ;;  %946 = vmatprep.mubr.msk.f32.mxu0 %vm238_vm1, %v226_v33 }
  0xf1   :  { %969 = vmatmul.mubr.msk.f32.vlgmr.msra.gmra.mrb[4].mxu1 %vm238_vm1, %v433_v34  ;;  %947 = vmatmul.mubr.msk.f32.gmra.mrb[4].mxu0 %vm238_vm1, %v227_v35 }
  0xf2   :  { %971 = vmatprep.mubr.msk.f32.mxu1 %vm238_vm1, %v434_v36  ;;  %949 = vmatprep.mubr.msk.f32.mxu0 %vm238_vm1, %v228_v37 }
  0xf5   :  { %972 = vmatmul.mubr.msk.f32.gmra.mrb[6].mxu1 %vm238_vm1, %v435_v38  ;;  %950 = vmatmul.mubr.msk.f32.gmra.mrb[6].mxu0 %vm238_vm1, %v229_v39 }
  0xf6   :  { %974 = vmatprep.mubr.msk.f32.mxu1 %vm238_vm1, %v436_v40  ;;  %952 = vmatprep.mubr.msk.f32.mxu0 %vm238_vm1, %v230_v41 }
  0xf9   :  { %975 = vmatmul.mubr.msk.f32.gmra.mrb[8].mxu1 %vm238_vm1, %v437_v42  ;;  %953 = vmatmul.mubr.msk.f32.gmra.mrb[8].mxu0 %vm238_vm1, %v231_v43 }
  0xfa   :  { %977 = vmatprep.mubr.msk.f32.mxu1 %vm238_vm1, %v438_v44  ;;  %955 = vmatprep.mubr.msk.f32.mxu0 %vm238_vm1, %v232_v45 }
  0xfd   :  { %978 = vmatmul.mubr.msk.f32.gmra.mrb[10].mxu1 %vm238_vm1, %v439_v46  ;;  %956 = vmatmul.mubr.msk.f32.gmra.mrb[10].mxu0 %vm238_vm1, %v233_v47 }
  0xfe   :  { %980 = vmatprep.mubr.msk.f32.mxu1 %vm238_vm1, %v440_v48  ;;  %958 = vmatprep.mubr.msk.f32.mxu0 %vm238_vm1, %v234_v49 }
 0x101   :  { %981 = vmatmul.mubr.msk.f32.gmra.mrb[12].mxu1 %vm238_vm1, %v441_v50  ;;  %959 = vmatmul.mubr.msk.f32.gmra.mrb[12].mxu0 %vm238_vm1, %v235_v51 }
 0x102   :  { %983 = vmatprep.mubr.msk.f32.mxu1 %vm238_vm1, %v442_v52  ;;  %961 = vmatprep.mubr.msk.f32.mxu0 %vm238_vm1, %v236_v53 }
 0x105   :  { %984 = vmatmul.mubr.msk.f32.gmra.mrb[14].mxu1 %vm238_vm1, %v443_v54  ;;  %962 = vmatmul.mubr.msk.f32.gmra.mrb[14].mxu0 %vm238_vm1, %v237_v55  ;;  %v1115_v55 = vmov 1.0  }
 0x106   :  { %986 = vmatprep.mubr.msk.f32.mxu1 %vm238_vm1, %v444_v56  ;;  %1024 = vmatprep.mubr.msk.f32.mxu0 %vm1113_vm2, %v1114_v61  ;;  %v657_v56 = vld [vmem:[%s1395_s8] sm:$0x1] }
 0x109   :  { %987 = vmatmul.mubr.msk.f32.gmra.mrb[16].mxu1 %vm238_vm1, %v445_v57 }
 0x10a   :  { %989 = vmatprep.mubr.msk.f32.mxu1 %vm238_vm1, %v446_v58 }
 0x10d   :  { %990 = vmatmul.mubr.msk.f32.gmra.mrb[18].mxu1 %vm238_vm1, %v447_v59 }
 0x1bc   :  { %v942_v62 = vpop.f32.mrb[0].mxu0 }
 0x1bd   :  { %v353_v63 = vpop.f32.mrb[1].mxu0 }
 0x1c0   :  { %v945_v0 = vpop.f32.mrb[2].mxu0 }
 0x1c1   :  { %v363_v1 = vpop.f32.mrb[3].mxu0 }
 0x1c4   :  { %v970_v2 = vpop.f32.mrb[4].mxu1  ;;  %v948_v3 = vpop.f32.mrb[4].mxu0 }
 0x1c5   :  { %v642_v4 = vmul.f32 %v970_v2, %v942_v62  ;;  %v562_v5 = vpop.f32.mrb[5].mxu1  ;;  %v373_v6 = vpop.f32.mrb[5].mxu0 }
 0x1c6   :  { %v641_v7 = vmul.f32 %v562_v5, %v353_v63 }
 0x1c8   :  { %v1052_v9 = vpack.c.bf16 %v642_v4, %v641_v7  ;;  %v973_v10 = vpop.f32.mrb[6].mxu1  ;;  %v951_v11 = vpop.f32.mrb[6].mxu0 }
 0x1c9   :  { %v644_v12 = vmul.f32 %v973_v10, %v945_v0  ;;  %v572_v13 = vpop.f32.mrb[7].mxu1  ;;  %v383_v14 = vpop.f32.mrb[7].mxu0 }
 0x1ca   :  { %1054 = vmatpush3.bf16.xpose.msk.msra.mxu0 %vm1344_vm3, %v1052_v9  ;;  %v643_v15 = vmul.f32 %v572_v13, %v363_v1 }
 0x1cb   :  { %1055 = vmatprep.subr.bf16.mxu0 %v1112_v60 }
 0x1cc   :  { %v1056_v16 = vpack.c.bf16 %v644_v12, %v643_v15  ;;  %v976_v17 = vpop.f32.mrb[8].mxu1  ;;  %v954_v18 = vpop.f32.mrb[8].mxu0 }
 0x1cd   :  { %v646_v19 = vmul.f32 %v976_v17, %v948_v3  ;;  %v582_v20 = vpop.f32.mrb[9].mxu1  ;;  %v393_v21 = vpop.f32.mrb[9].mxu0 }
 0x1ce   :  { %v645_v22 = vmul.f32 %v582_v20, %v373_v6 }
 0x1d0   :  { %v1060_v23 = vpack.c.bf16 %v646_v19, %v645_v22  ;;  %v979_v24 = vpop.f32.mrb[10].mxu1  ;;  %v957_v25 = vpop.f32.mrb[10].mxu0 }
 0x1d1   :  { %v648_v26 = vmul.f32 %v979_v24, %v951_v11  ;;  %v592_v27 = vpop.f32.mrb[11].mxu1  ;;  %v403_v28 = vpop.f32.mrb[11].mxu0 }
 0x1d2   :  { %1058 = vmatpush3.bf16.xpose.msk.msra.mxu0 %vm1344_vm3, %v1056_v16  ;;  %v647_v29 = vmul.f32 %v592_v27, %v383_v14 }
 0x1d3   :  { %1059 = vmatprep.subr.bf16.mxu0 %v1112_v60 }
 0x1d4   :  { %v1064_v30 = vpack.c.bf16 %v648_v26, %v647_v29  ;;  %v982_v31 = vpop.f32.mrb[12].mxu1  ;;  %v960_v32 = vpop.f32.mrb[12].mxu0 }
 0x1d5   :  { %v650_v33 = vmul.f32 %v982_v31, %v954_v18  ;;  %v602_v34 = vpop.f32.mrb[13].mxu1  ;;  %v413_v35 = vpop.f32.mrb[13].mxu0 }
 0x1d6   :  { %v649_v36 = vmul.f32 %v602_v34, %v393_v21 }
 0x1d8   :  { %v1068_v37 = vpack.c.bf16 %v650_v33, %v649_v36  ;;  %v985_v38 = vpop.f32.mrb[14].mxu1  ;;  %v963_v39 = vpop.f32.mrb[14].mxu0 }
 0x1d9   :  { %v652_v40 = vmul.f32 %v985_v38, %v957_v25  ;;  %v612_v41 = vpop.f32.mrb[15].mxu1  ;;  %v423_v42 = vpop.f32.mrb[15].mxu0 }
 0x1da   :  { %1062 = vmatpush3.bf16.xpose.msk.msra.mxu0 %vm1344_vm3, %v1060_v23  ;;  %v651_v43 = vmul.f32 %v612_v41, %v403_v28 }
 0x1db   :  { %1063 = vmatprep.subr.bf16.mxu0 %v1112_v60 }
 0x1dc   :  { %v1072_v44 = vpack.c.bf16 %v652_v40, %v651_v43  ;;  %v988_v45 = vpop.f32.mrb[16].mxu1 }
 0x1dd   :  { %v654_v46 = vmul.f32 %v988_v45, %v960_v32  ;;  %v622_v47 = vpop.f32.mrb[17].mxu1 }
 0x1de   :  { %v653_v48 = vmul.f32 %v622_v47, %v413_v35 }
 0x1e0   :  { %v1076_v49 = vpack.c.bf16 %v654_v46, %v653_v48  ;;  %v991_v50 = vpop.f32.mrb[18].mxu1 }
 0x1e1   :  { %v656_v51 = vmul.f32 %v991_v50, %v963_v39  ;;  %v632_v52 = vpop.f32.mrb[19].mxu1 }
 0x1e2   :  { %1066 = vmatpush3.bf16.xpose.msk.msra.mxu0 %vm1344_vm3, %v1064_v30  ;;  %v655_v53 = vmul.f32 %v632_v52, %v423_v42 }
 0x1e3   :  { %1067 = vmatprep.subr.bf16.mxu0 %v1112_v60 }
 0x1e4   :  { %v1080_v54 = vpack.c.bf16 %v656_v51, %v655_v53 }
 0x1ea   :  { %1070 = vmatpush3.bf16.xpose.msk.msra.mxu0 %vm1344_vm3, %v1068_v37 }
 0x1eb   :  { %1071 = vmatprep.subr.bf16.mxu0 %v1112_v60 }
 0x1f2   :  { %1074 = vmatpush3.bf16.xpose.msk.msra.mxu0 %vm1344_vm3, %v1072_v44 }
 0x1f3   :  { %1075 = vmatprep.subr.bf16.mxu0 %v1112_v60 }
 0x1fa   :  { %1078 = vmatpush3.bf16.xpose.msk.msra.mxu0 %vm1344_vm3, %v1076_v49 }
 0x1fb   :  { %1079 = vmatprep.subr.bf16.mxu0 %v1112_v60 }
 0x202   :  { %1082 = vmatpush3.bf16.xpose.msk.msra.mxu0 %vm1344_vm3, %v1080_v54 }
 0x209   :  { %1025 = vmatmul.mubr.msk.f32.vlgmr.msra.gmra.mrb[16].mxu0 %vm46_vm0, %v1115_v55 }
 0x2dc   :  { %v775_v57 = vpop.f32.mrb[16].mxu0 }
 0x2dd   :  { %v776_v58 = vadd.f32 %v775_v57, %v657_v56  ;;  %v1026_v59 = vpop.f32.mrb[17].mxu0 }
 0x2df   :  { %779 = vst [vmem:[#allocation2] sm:$0x1] %v776_v58 }
 0x2e0   :  { %1099 = shalt.err (!%p1096_p4)
}
 0x2e1   :  { %s1100_s25 = scalar_lea.hbm %s1396_s9, 16 }
 0x2e2   :  { %p1101_p5 = scmp.ne.s32.totalorder %s1396_s9, %s1100_s25  ;;  %p1104_p6 = scmp.lt.u32.totalorder %s1100_s25, %s1396_s9 }
 0x2e4   :  { %p1106_p7 = pnand %p1104_p6, %p1101_p5 }
 0x2e6   :  { %1109 = shalt.err (!%p1106_p7)
}
 0x2e7   :  { %789 = dma.vmem_to_hbm [thread:$0]  %s787_s21, 16, %s1396_s9, [#allocation3]  }
 0x2e8   :  { %1110 = dma.done.wait [#allocation3], 16  }
 0x2e9   :  { %1111 = vsyncadd [#allocation3], 4294967280 }
 0x2ea   :  { %793 = vsyncpa [#allocation3], 1 }

</bundles_post_ra>
